<compile_context>
chip_gen: v5e
topology: v5e:2x2
jax: 0.10.0
libtpu: 0.0.40
codegen_flags: <defaults>
</compile_context>

<pallas_src>
import functools

import jax
import jax.numpy as jnp
from jax.experimental import pallas as pl
from jax.experimental.pallas import tpu as pltpu


def _round_up(a, b):
    return (a + b - 1) // b * b


def _ls_ce_kernel(x_ref, label_ref, out_ref, acc_ref, *,
                  n_valid, tile_n, epsilon, mean_reduce):
    i = pl.program_id(0)

    @pl.when(i == 0)
    def _():
        acc_ref[0] = jnp.float32(0.0)   # running  -sum_c log_preds
        acc_ref[1] = jnp.float32(0.0)   # running  nll

    x = x_ref[...].astype(jnp.float32)              # [tile_n, C]
    label = label_ref[...]                          # [tile_n, 1] int32
    tn, c = x.shape

    # log-softmax pieces: 1 exp per element + 1 log per row on the EUP.
    m = jnp.max(x, axis=-1, keepdims=True)          # [tile_n, 1]
    e = jnp.exp(x - m)
    s = jnp.sum(e, axis=-1, keepdims=True)
    logz = m + jnp.log(s)                           # logsumexp, [tile_n, 1]

    sum_x = jnp.sum(x, axis=-1, keepdims=True)      # [tile_n, 1]

    # x[i, target[i]] via a one-hot compare (no cross-lane gather needed)
    cls_ids = jax.lax.broadcasted_iota(jnp.int32, (tn, c), 1)
    onehot = cls_ids == label
    x_t = jnp.sum(jnp.where(onehot, x, 0.0), axis=-1, keepdims=True)

    # mask batch-padding rows
    row_ids = i * tile_n + jax.lax.broadcasted_iota(jnp.int32, (tn, 1), 0)
    valid = (row_ids < n_valid).astype(jnp.float32)

    # -sum_c log_preds = C*logZ - sum_c x ;  nll = logZ - x_target
    neg_sum_logpred = c * logz - sum_x
    nll = logz - x_t

    acc_ref[0] += jnp.sum(neg_sum_logpred * valid)
    acc_ref[1] += jnp.sum(nll * valid)

    @pl.when(i == pl.num_programs(0) - 1)
    def _():
        norm = (1.0 / n_valid) if mean_reduce else 1.0   # static constants
        smooth = acc_ref[0] * (epsilon * norm / c)
        nll_term = acc_ref[1] * ((1.0 - epsilon) * norm)
        out_ref[0, 0] = smooth + nll_term


@functools.partial(jax.jit, static_argnames=("epsilon", "reduction", "tile_rows"))
def label_smoothing_cross_entropy(x, target, epsilon=0.1, reduction="mean",
                                  tile_rows=512):
    """x: [N, C] logits (f32 or bf16), target: [N] int labels -> scalar loss."""
    # TODO(synk): reduction=None (unreduced per-example output) not implemented;
    #             only the 'mean' (default) and 'sum' paths are fused here.
    n, c = x.shape
    n_pad8 = _round_up(n, 8)
    tile_n = min(tile_rows, n_pad8)          # multiple of 8 by construction
    n_padded = _round_up(n, tile_n)

    if n_padded != n:
        x = jnp.pad(x, ((0, n_padded - n), (0, 0)))
        target = jnp.pad(target, (0, n_padded - n))
    label2d = target.astype(jnp.int32).reshape(n_padded, 1)

    kernel = functools.partial(
        _ls_ce_kernel, n_valid=n, tile_n=tile_n, epsilon=epsilon,
        mean_reduce=(reduction == "mean"))

    out = pl.pallas_call(
        kernel,
        out_shape=jax.ShapeDtypeStruct((1, 1), jnp.float32),
        grid=(n_padded // tile_n,),
        in_specs=[pl.BlockSpec((tile_n, c), lambda i: (i, 0)),
                  pl.BlockSpec((tile_n, 1), lambda i: (i, 0))],
        out_specs=pl.BlockSpec(memory_space=pltpu.MemorySpace.SMEM),
        scratch_shapes=[pltpu.SMEM((2,), jnp.float32)],
        compiler_params=pltpu.CompilerParams(
            dimension_semantics=("arbitrary",),
            vmem_limit_bytes=32 * 1024 * 1024),
    )(x, label2d)
    return out[0, 0]


def _reference(x, target, epsilon=0.1, reduction="mean"):
    """Pure-JAX mirror of the PyTorch forward (for sanity check)."""
    log_preds = jax.nn.log_softmax(x.astype(jnp.float32), axis=-1)
    n = x.shape[-1]
    per_row = -jnp.sum(log_preds, axis=-1)
    nll_rows = -jnp.take_along_axis(
        log_preds, target[:, None].astype(jnp.int32), axis=-1)[:, 0]
    if reduction == "mean":
        loss, nll = jnp.mean(per_row), jnp.mean(nll_rows)
    else:
        loss, nll = jnp.sum(per_row), jnp.sum(nll_rows)
    return epsilon * (loss / n) + (1 - epsilon) * nll


if __name__ == "__main__":
    key = jax.random.PRNGKey(0)
    k1, k2 = jax.random.split(key)

    batch, num_classes = 8, 128          # classes on lanes -> lane-dense vregs
    x = jax.random.normal(k1, (batch, num_classes), dtype=jnp.float32) * 2.0
    target = jax.random.randint(k2, (batch,), 0, num_classes, dtype=jnp.int32)

    loss = label_smoothing_cross_entropy(x, target)
    jax.block_until_ready(loss)

    ref = _reference(x, target)
    assert jnp.allclose(loss, ref, rtol=1e-5, atol=1e-5), (float(loss), float(ref))

    print("KERNEL_OK")
</pallas_src>

<mosaic_0001>
module attributes {stable_mosaic.version = 11 : i64} {
  func.func @_ls_ce_kernel(%arg0: i32, %arg1: memref<8x128xf32, #tpu.memory_space<vmem>>, %arg2: memref<8x1xi32, #tpu.memory_space<vmem>>, %arg3: memref<1x1xf32, #tpu.memory_space<smem>>, %arg4: memref<2xf32, #tpu.memory_space<smem>>) attributes {dimension_semantics = [#tpu.dimension_semantics<arbitrary>], iteration_bounds = array<i64: 1>, scalar_prefetch = 0 : i64, scratch_operands = 1 : i64, tpu.core_type = #tpu.core_type<tc>, window_params = [{transform_indices = @transform_0, window_bounds = array<i64: 8, 128>}, {transform_indices = @transform_1, window_bounds = array<i64: 8, 1>}, {transform_indices = @transform_2, window_bounds = array<i64: 1, 1>}]} {
    %c0_i32 = arith.constant 0 : i32
    %0 = arith.cmpi eq, %arg0, %c0_i32 : i32
    %1 = arith.extui %0 : i1 to i32
    %c0_i32_0 = arith.constant 0 : i32
    %2 = arith.cmpi ne, %1, %c0_i32_0 : i32
    scf.if %2 {
      %cst_17 = arith.constant 0.000000e+00 : f32
      %c0_18 = arith.constant 0 : index
      %54 = memref.load %arg4[%c0_18] : memref<2xf32, #tpu.memory_space<smem>>
      memref.store %cst_17, %arg4[%c0_18] : memref<2xf32, #tpu.memory_space<smem>>
      %cst_19 = arith.constant 0.000000e+00 : f32
      %c1_20 = arith.constant 1 : index
      %55 = memref.load %arg4[%c1_20] : memref<2xf32, #tpu.memory_space<smem>>
      memref.store %cst_19, %arg4[%c1_20] : memref<2xf32, #tpu.memory_space<smem>>
    } else {
    }
    %c0 = arith.constant 0 : index
    %c0_1 = arith.constant 0 : index
    %3 = vector.load %arg1[%c0, %c0_1] : memref<8x128xf32, #tpu.memory_space<vmem>>, vector<8x128xf32>
    %c0_2 = arith.constant 0 : index
    %c0_3 = arith.constant 0 : index
    %4 = vector.load %arg2[%c0_2, %c0_3] : memref<8x1xi32, #tpu.memory_space<vmem>>, vector<8x1xi32>
    %cst = arith.constant dense<0xFF800000> : vector<8xf32>
    %5 = vector.multi_reduction <maximumf>, %3, %cst [1] : vector<8x128xf32> to vector<8xf32>
    %6 = vector.shape_cast %5 : vector<8xf32> to vector<8x1xf32>
    %7 = vector.broadcast %6 : vector<8x1xf32> to vector<8x128xf32>
    %8 = arith.subf %3, %7 : vector<8x128xf32>
    %9 = math.exp %8 : vector<8x128xf32>
    %cst_4 = arith.constant dense<0.000000e+00> : vector<8xf32>
    %10 = vector.multi_reduction <add>, %9, %cst_4 [1] : vector<8x128xf32> to vector<8xf32>
    %11 = vector.shape_cast %10 : vector<8xf32> to vector<8x1xf32>
    %12 = math.log %11 : vector<8x1xf32>
    %13 = arith.addf %6, %12 : vector<8x1xf32>
    %cst_5 = arith.constant dense<0.000000e+00> : vector<8xf32>
    %14 = vector.multi_reduction <add>, %3, %cst_5 [1] : vector<8x128xf32> to vector<8xf32>
    %15 = vector.shape_cast %14 : vector<8xf32> to vector<8x1xf32>
    %16 = tpu.iota {dimensions = array<i32: 1>} : vector<8x128xi32>
    %17 = vector.broadcast %4 : vector<8x1xi32> to vector<8x128xi32>
    %18 = arith.cmpi eq, %16, %17 : vector<8x128xi32>
    %cst_6 = arith.constant 0.000000e+00 : f32
    %19 = vector.broadcast %cst_6 : f32 to vector<8x128xf32>
    %20 = arith.select %18, %3, %19 : vector<8x128xi1>, vector<8x128xf32>
    %cst_7 = arith.constant dense<0.000000e+00> : vector<8xf32>
    %21 = vector.multi_reduction <add>, %20, %cst_7 [1] : vector<8x128xf32> to vector<8xf32>
    %22 = vector.shape_cast %21 : vector<8xf32> to vector<8x1xf32>
    %c8_i32 = arith.constant 8 : i32
    %23 = arith.muli %arg0, %c8_i32 : i32
    %24 = tpu.iota {dimensions = array<i32: 0>} : vector<8x1xi32>
    %25 = vector.broadcast %23 : i32 to vector<8x1xi32>
    %26 = arith.addi %25, %24 : vector<8x1xi32>
    %c8_i32_8 = arith.constant 8 : i32
    %27 = vector.broadcast %c8_i32_8 : i32 to vector<8x1xi32>
    %28 = arith.cmpi slt, %26, %27 : vector<8x1xi32>
    %29 = arith.extui %28 : vector<8x1xi1> to vector<8x1xi32>
    %30 = arith.sitofp %29 : vector<8x1xi32> to vector<8x1xf32>
    %cst_9 = arith.constant 1.280000e+02 : f32
    %31 = vector.broadcast %cst_9 : f32 to vector<8x1xf32>
    %32 = arith.mulf %31, %13 : vector<8x1xf32>
    %33 = arith.subf %32, %15 : vector<8x1xf32>
    %34 = arith.subf %13, %22 : vector<8x1xf32>
    %c0_10 = arith.constant 0 : index
    %35 = memref.load %arg4[%c0_10] : memref<2xf32, #tpu.memory_space<smem>>
    %36 = arith.mulf %33, %30 : vector<8x1xf32>
    %37 = vector.shape_cast %36 : vector<8x1xf32> to vector<1x8x1xf32>
    %cst_11 = arith.constant dense<0.000000e+00> : vector<1xf32>
    %38 = vector.multi_reduction <add>, %37, %cst_11 [1, 2] : vector<1x8x1xf32> to vector<1xf32>
    %39 = vector.shape_cast %38 : vector<1xf32> to vector<1x1x1xf32>
    %40 = vector.extract %39[0, 0, 0] : f32 from vector<1x1x1xf32>
    %41 = arith.addf %35, %40 : f32
    %c0_12 = arith.constant 0 : index
    %42 = memref.load %arg4[%c0_12] : memref<2xf32, #tpu.memory_space<smem>>
    memref.store %41, %arg4[%c0_12] : memref<2xf32, #tpu.memory_space<smem>>
    %c1 = arith.constant 1 : index
    %43 = memref.load %arg4[%c1] : memref<2xf32, #tpu.memory_space<smem>>
    %44 = arith.mulf %34, %30 : vector<8x1xf32>
    %45 = vector.shape_cast %44 : vector<8x1xf32> to vector<1x8x1xf32>
    %cst_13 = arith.constant dense<0.000000e+00> : vector<1xf32>
    %46 = vector.multi_reduction <add>, %45, %cst_13 [1, 2] : vector<1x8x1xf32> to vector<1xf32>
    %47 = vector.shape_cast %46 : vector<1xf32> to vector<1x1x1xf32>
    %48 = vector.extract %47[0, 0, 0] : f32 from vector<1x1x1xf32>
    %49 = arith.addf %43, %48 : f32
    %c1_14 = arith.constant 1 : index
    %50 = memref.load %arg4[%c1_14] : memref<2xf32, #tpu.memory_space<smem>>
    memref.store %49, %arg4[%c1_14] : memref<2xf32, #tpu.memory_space<smem>>
    %c0_i32_15 = arith.constant 0 : i32
    %51 = arith.cmpi eq, %arg0, %c0_i32_15 : i32
    %52 = arith.extui %51 : i1 to i32
    %c0_i32_16 = arith.constant 0 : i32
    %53 = arith.cmpi ne, %52, %c0_i32_16 : i32
    scf.if %53 {
      %c0_17 = arith.constant 0 : index
      %54 = memref.load %arg4[%c0_17] : memref<2xf32, #tpu.memory_space<smem>>
      %cst_18 = arith.constant 9.76562514E-5 : f32
      %55 = arith.mulf %54, %cst_18 : f32
      %c1_19 = arith.constant 1 : index
      %56 = memref.load %arg4[%c1_19] : memref<2xf32, #tpu.memory_space<smem>>
      %cst_20 = arith.constant 1.125000e-01 : f32
      %57 = arith.mulf %56, %cst_20 : f32
      %58 = arith.addf %55, %57 : f32
      %c0_21 = arith.constant 0 : index
      %c0_22 = arith.constant 0 : index
      %59 = memref.load %arg3[%c0_21, %c0_22] : memref<1x1xf32, #tpu.memory_space<smem>>
      memref.store %58, %arg3[%c0_21, %c0_22] : memref<1x1xf32, #tpu.memory_space<smem>>
    } else {
    }
    return
  }
  func.func @transform_0(%arg0: i32) -> (i32, i32) {
    %c0_i32 = arith.constant 0 : i32
    %c0_i32_0 = arith.constant 0 : i32
    return %arg0, %c0_i32 : i32, i32
  }
  func.func @transform_1(%arg0: i32) -> (i32, i32) {
    %c0_i32 = arith.constant 0 : i32
    %c0_i32_0 = arith.constant 0 : i32
    return %arg0, %c0_i32 : i32, i32
  }
  func.func @transform_2(%arg0: i32) -> (i32, i32) {
    %c0_i32 = arith.constant 0 : i32
    %c0_i32_0 = arith.constant 0 : i32
    %c0_i32_1 = arith.constant 0 : i32
    return %c0_i32, %c0_i32_0 : i32, i32
  }
}

</mosaic_0001>

<bundles_post_ra>
// kernel: label_smoothing_cross_entropy.1
= control target key start
LH: loop header
LB: loop body
LE: loop exit
PB: predicated region body
PF: predicated region fallthrough
CT: control target
= control target key end

     0   :  { %s163_s0 = inlined_call_operand.vmem [shape: f32[8,128], index: 0, kind: input, shape index: {}]   ;;  %s164_s1 = inlined_call_operand.vmem [shape: s32[8,1], index: 1, kind: input, shape index: {}]   ;;  %s165_s2 = inlined_call_operand.hbm [shape: f32[1,1], index: 2, kind: output, shape index: {}]  }
   0x1   :  { %v20_v0 = vld [vmem:[%s163_s0] sm:$0xff] }
   0x2   :  { %7 = vsyncpa [#allocation4], 0  ;;  %22 = vmax.xlane.f32.xlu0 %v20_v0  ;;  %v137_v1 = vmov 0   ;;  %v21_v2 = vld [vmem:[%s164_s1] sm:$0xff]  ;;  %v34_v7 = vlaneseq  ;;  %vm56_vm1 = vcmask 7168   ;;  %s100_s14 = sshll.u32 %s165_s2, 4  ;;  %s101_s14 = int_to_ptr.hbm [resolvable:$true] %s100_s14 }
   0x3   :  { %118 = vset.pattern.permute.xlu0 %v137_v1  ;;  %s138_s19 = smov [#allocation3]  }
   0x4   :  { %v35_v8 = vand.u32 127, %v34_v7 }
  0x16   :  { %37 = vperm.xlu0 %118, %v21_v2  }
  0x75   :  { %v23_v3 = vpop.xlane.xlu0 %22 }
  0x76   :  { %v24_v4 = vsub.f32 %v20_v0, %v23_v3 }
  0x78   :  { %v25_v5 = vmul.f32 1.442695, %v24_v4 }
  0x7a   :  { %119 = vpow2.f32 %v25_v5 }
  0x80   :  { %v120_v6 = vpop.eup %119 }
  0x81   :  { %27 = vadd.xlane.f32.xlu1 %v120_v6 }
  0x88   :  { %v38_v9 = vpop.permute.xlu0 %37 }
  0x89   :  { %vm39_vm0 = vcmp.eq.s32.totalorder %v35_v8, %v38_v9  ;;  %32 = vadd.xlane.f32.xlu1 %v20_v0 }
  0x8a   :  { %v40_v10 = vsel %vm39_vm0, %v20_v0, 0.0 }
  0x8b   :  { %41 = vadd.xlane.f32.xlu2 %v40_v10 }
  0xf4   :  { %v28_v11 = vpop.xlane.xlu1 %27 }
  0xf5   :  { %121 = vlog2.f32 %v28_v11 }
  0xfb   :  { %v122_v12 = vpop.eup %121 }
  0xfc   :  { %v30_v13 = vmul.f32 0.6931472, %v122_v12  ;;  %v33_v16 = vpop.xlane.xlu1 %32 }
  0xfe   :  { %v31_v14 = vadd.f32 %v30_v13, %v23_v3  ;;  %v42_v15 = vpop.xlane.xlu2 %41 }
 0x100   :  { %v53_v17 = vsub.f32 %v31_v14, %v42_v15  ;;  %v51_v18 = vmul.f32 128.0, %v31_v14 }
 0x102   :  { %v52_v19 = vsub.f32 %v51_v18, %v33_v16  ;;  %v72_v20 = vsel %vm56_vm1, %v53_v17, 0.0 }
 0x103   :  { %73 = vadd.xlane.f32.xlu1 %v72_v20 }
 0x104   :  { %v57_v21 = vsel %vm56_vm1, %v52_v19, 0.0 }
 0x105   :  { %58 = vadd.xlane.f32.xlu2 %v57_v21 }
 0x176   :  { %v74_v22 = vpop.xlane.xlu1 %73 }
 0x177   :  { %v75_v23 = vrot.slane %v74_v22, 4 }
 0x178   :  { %v59_v24 = vpop.xlane.xlu2 %58 }
 0x179   :  { %v76_v25 = vadd.f32 %v75_v23, %v74_v22  ;;  %v60_v26 = vrot.slane %v59_v24, 4 }
 0x17b   :  { %v77_v27 = vrot.slane %v76_v25, 2  ;;  %v61_v28 = vadd.f32 %v60_v26, %v59_v24 }
 0x17d   :  { %v78_v29 = vadd.f32 %v77_v27, %v76_v25  ;;  %v62_v30 = vrot.slane %v61_v28, 2 }
 0x17f   :  { %v63_v31 = vadd.f32 %v62_v30, %v61_v28  ;;  %v79_v32 = vrot.slane %v78_v29, 1 }
 0x181   :  { %v64_v33 = vrot.slane %v63_v31, 1  ;;  %v80_v35 = vadd.f32 %v79_v32, %v78_v29 }
 0x183   :  { %v65_v34 = vadd.f32 %v64_v33, %v63_v31 }
 0x185   :  { %112 = vpush %v65_v34 }
 0x186   :  { %114 = vpush %v80_v35 }
 0x1b6   :  { %s113_s0 = spop %112 }
 0x1b7   :  { %s89_s15 = smul.f32 9.765625e-05, %s113_s0  ;;  %s115_s16 = spop %114 }
 0x1b8   :  { %s91_s17 = smul.f32 0.1125, %s115_s16 }
 0x1ba   :  { %s92_s18 = sadd.f32 %s91_s17, %s89_s15 }
 0x1bc   :  { %94 = sst [smem:[#allocation3]] %s92_s18 }
 0x1bd   :  { %103 = dma.smem_to_hbm %s138_s19, 16, %s101_s14, [#allocation4]  }
 0x1be   :  { %135 = dma.done.wait [#allocation4], 16  }
 0x1bf   :  { %136 = vsyncadd [#allocation4], 4294967280 }
 0x1c0   :  { %108 = sfence }
 0x1c1   :  { %109 = vsyncpa [#allocation4], 1 }

</bundles_post_ra>
